<compile_context>
chip_gen: v5e
topology: v5e:2x2
jax: 0.10.0
libtpu: 0.0.40
codegen_flags: <defaults>
</compile_context>

<pallas_src>
import math

import jax
import jax.numpy as jnp
from jax import lax
from jax.experimental import pallas as pl
from jax.experimental.pallas import tpu as pltpu


def classifier_kernel(x_ref, w1_ref, b1_ref, w2_ref, b2_ref, w3t_ref, b3_ref, o_ref):
    """Fused 3-layer MLP head for one batch tile.

    x_ref  : (tb, input_dim) f32 or bf16 activations (batch-tiled)
    w1/w2  : bf16 weights in [in, out] layout  -> plain `x @ W` on the MXU
    w3t    : (1, hidden) bf16 (PyTorch [out, in] layout; out == 1)
    b*     : f32 bias rows
    o_ref  : (1, tb) f32 -- lane-dense sigmoid(logits) row for this tile
    """
    # TODO(synk): dropout(p=0.5) is identity in inference mode; training-mode
    # dropout would use pltpu.prng_seed + pltpu.prng_random_bits + 1/(1-p) scale.
    x = x_ref[...].astype(jnp.bfloat16)  # free if x is already streamed as bf16

    h = jnp.dot(x, w1_ref[...], preferred_element_type=jnp.float32) + b1_ref[...]
    h = jnp.maximum(h, 0.0)

    h = jnp.dot(h.astype(jnp.bfloat16), w2_ref[...],
                preferred_element_type=jnp.float32) + b2_ref[...]
    h = jnp.maximum(h, 0.0)

    # fc3: contract the hidden axis of (1, H) against (tb, H) so the result is
    # already (1, tb) -- lane-dense, no (tb, 1) masked stores and no transpose.
    logits_t = lax.dot_general(
        w3t_ref[...], h.astype(jnp.bfloat16),
        dimension_numbers=(((1,), (1,)), ((), ())),
        preferred_element_type=jnp.float32,
    ) + b3_ref[...]

    o_ref[...] = jax.nn.sigmoid(logits_t)


def _round_up(v, m):
    return ((v + m - 1) // m) * m


def _vmem_budget_bytes():
    """Conservative per-generation VMEM budget (v7x 64 MiB phys, v5e/v6e 128 MiB)."""
    try:
        phys = int(pltpu.get_tpu_info().vmem_capacity_bytes)
    except Exception:
        phys = 64 << 20  # conservative fallback (v7x per-TC physical)
    return min(phys // 2, 64 << 20)


def _tile_cost_bytes(tb, input_dim, hidden_dim, x_itemsize, weight_bytes):
    return (2 * tb * input_dim * x_itemsize   # x tile, double-buffered
            + 2 * tb * 4                      # (1, tb) f32 output row, double-buffered
            + 3 * tb * hidden_dim * 4         # hidden activations / temporaries (est.)
            + weight_bytes                    # single-buffered VMEM-resident operands
            + (2 << 20))                      # compiler-internal headroom


def _select_tb(batch, block_batch, input_dim, hidden_dim, x_itemsize,
               weight_bytes, budget):
    if batch < 256 and batch <= block_batch:
        # Single full-extent tile: block dims == array dims, so no (8,128)
        # divisibility issue and no padding needed.
        return batch
    if batch <= block_batch:
        # Force >=2 grid steps so both v7x TensorCores get work; near-free
        # elsewhere (~0.35us/step).
        tb = _round_up(pl.cdiv(batch, 2), 128)
    else:
        # User tile, rounded to lane-dense (and MXU-friendly) multiples of 128.
        tb = _round_up(min(block_batch, batch), 128)
    # Shrink (staying in multiples of 128, i.e. 512->256->128) until the tile
    # working set fits the VMEM budget.
    while tb > 128 and _tile_cost_bytes(tb, input_dim, hidden_dim,
                                        x_itemsize, weight_bytes) > budget:
        tb = max(128, _round_up(tb // 2, 128))
    return tb


def classifier_forward(x, params, *, block_batch=512):
    """x: [batch, input_dim] f32 or bf16. Returns [batch] f32 sigmoid probs."""
    w1, b1, w2, b2, w3t, b3 = params
    batch, input_dim = x.shape
    hidden_dim = w1.shape[1]
    assert w3t.shape[0] == 1, "kernel specialized for output_dim == 1 (squeeze(1))"

    x_itemsize = jnp.dtype(x.dtype).itemsize
    weight_bytes = sum(int(a.size) * jnp.dtype(a.dtype).itemsize
                       for a in (w1, b1, w2, b2, w3t, b3))
    budget = _vmem_budget_bytes()
    tb = _select_tb(batch, block_batch, input_dim, hidden_dim,
                    x_itemsize, weight_bytes, budget)
    num_tiles = pl.cdiv(batch, tb)  # last tile may be partial (masked stores)

    # Constant-index VMEM residents: single-buffered (double-buffering a block
    # whose index never changes costs 2x VMEM for nothing).
    def resident(shape):
        return pl.BlockSpec(shape, lambda i: (0, 0),
                            pipeline_mode=pl.Buffered(1))

    flops = 2 * batch * (input_dim * hidden_dim + hidden_dim * hidden_dim + hidden_dim)
    bytes_accessed = (batch * input_dim * x_itemsize + weight_bytes + batch * 4)

    out = pl.pallas_call(
        classifier_kernel,
        out_shape=jax.ShapeDtypeStruct((1, batch), jnp.float32),
        grid=(num_tiles,),
        in_specs=[
            pl.BlockSpec((tb, input_dim), lambda i: (i, 0)),  # x: batch-tiled
            resident(w1.shape), resident(b1.shape),
            resident(w2.shape), resident(b2.shape),
            resident(w3t.shape), resident(b3.shape),
        ],
        out_specs=pl.BlockSpec((1, tb), lambda i: (0, i)),
        compiler_params=pltpu.CompilerParams(
            dimension_semantics=("parallel",),  # batch tiles shard across TCs (v7x)
            vmem_limit_bytes=int(budget),
        ),
        cost_estimate=pl.CostEstimate(
            flops=int(flops),
            transcendentals=int(batch),            # one sigmoid per row
            bytes_accessed=int(bytes_accessed),
        ),
    )(x, w1, b1, w2, b2, w3t, b3)

    # PyTorch: x.squeeze(1).sigmoid() with output_dim == 1 -> shape [batch].
    return out[0]


def xavier_normal(key, fan_in, fan_out, shape, dtype):
    # Matches nn.init.xavier_normal_ (gain=1): std = sqrt(2 / (fan_in + fan_out)).
    std = math.sqrt(2.0 / (fan_in + fan_out))
    return (std * jax.random.normal(key, shape, dtype=jnp.float32)).astype(dtype)


def init_params(key, input_dim, hidden_dim, output_dim=1):
    assert output_dim == 1
    k1, k2, k3 = jax.random.split(key, 3)
    # fc1/fc2 stored as [in, out] (transposed vs. PyTorch) so hot path is x @ W;
    # fc3 kept in PyTorch's native [out, in] = (1, hidden) for the lane-dense
    # dot_general. Weights bf16 (MXU-native), biases f32.
    w1 = xavier_normal(k1, input_dim, hidden_dim, (input_dim, hidden_dim), jnp.bfloat16)
    b1 = jnp.zeros((1, hidden_dim), jnp.float32)
    w2 = xavier_normal(k2, hidden_dim, hidden_dim, (hidden_dim, hidden_dim), jnp.bfloat16)
    b2 = jnp.zeros((1, hidden_dim), jnp.float32)
    w3t = xavier_normal(k3, hidden_dim, output_dim, (output_dim, hidden_dim), jnp.bfloat16)
    b3 = jnp.zeros((1, 1), jnp.float32)
    return (w1, b1, w2, b2, w3t, b3)


def reference_forward(x, params):
    w1, b1, w2, b2, w3t, b3 = params
    xf = x.astype(jnp.float32)
    w1f, w2f, w3f = (w.astype(jnp.float32) for w in (w1, w2, w3t))
    h = jnp.maximum(xf @ w1f + b1, 0.0)
    h = jnp.maximum(h @ w2f + b2, 0.0)
    return jax.nn.sigmoid(h @ w3f.T + b3)[:, 0]


if __name__ == "__main__":
    # Small, forward-consistent shapes: squeeze(1) implies output_dim == 1.
    input_dim, hidden_dim, output_dim = 32, 32, 1

    key = jax.random.PRNGKey(0)
    kx, kp, kx2 = jax.random.split(key, 3)
    params = init_params(kp, input_dim, hidden_dim, output_dim)

    # --- single full-extent tile (batch=8, f32 input) ---
    batch = 8
    x = jax.random.normal(kx, (batch, input_dim), dtype=jnp.float32)
    y = classifier_forward(x, params)
    jax.block_until_ready(y)
    ref = reference_forward(x, params)
    assert y.shape == (batch,)
    assert jnp.allclose(y, ref, atol=2e-2, rtol=2e-2)  # bf16 MXU vs f32 reference

    # --- forced >=2 tiles (batch=300 >= 256), partial last block, no host pad ---
    batch2 = 300
    x2 = jax.random.normal(kx2, (batch2, input_dim), dtype=jnp.float32)
    y2 = classifier_forward(x2, params)
    jax.block_until_ready(y2)
    ref2 = reference_forward(x2, params)
    assert y2.shape == (batch2,)
    assert jnp.allclose(y2, ref2, atol=2e-2, rtol=2e-2)

    # --- bf16 streamed input, multi-tile with tb=128 (3 tiles, last partial) ---
    x3 = x2.astype(jnp.bfloat16)
    y3 = classifier_forward(x3, params, block_batch=128)
    jax.block_until_ready(y3)
    ref3 = reference_forward(x3, params)
    assert y3.shape == (batch2,)
    assert jnp.allclose(y3, ref3, atol=2e-2, rtol=2e-2)

    print("KERNEL_OK")
</pallas_src>

<mosaic_0001>
module attributes {stable_mosaic.version = 11 : i64} {
  func.func @classifier_kernel(%arg0: i32, %arg1: memref<8x32xf32, #tpu.memory_space<vmem>>, %arg2: memref<32x32xbf16, #tpu.memory_space<vmem>>, %arg3: memref<1x32xf32, #tpu.memory_space<vmem>>, %arg4: memref<32x32xbf16, #tpu.memory_space<vmem>>, %arg5: memref<1x32xf32, #tpu.memory_space<vmem>>, %arg6: memref<1x32xbf16, #tpu.memory_space<vmem>>, %arg7: memref<1x1xf32, #tpu.memory_space<vmem>>, %arg8: memref<1x8xf32, #tpu.memory_space<vmem>>) attributes {dimension_semantics = [#tpu.dimension_semantics<parallel>], iteration_bounds = array<i64: 1>, scalar_prefetch = 0 : i64, scratch_operands = 0 : i64, tpu.core_type = #tpu.core_type<tc>, window_params = [{transform_indices = @transform_0, window_bounds = array<i64: 8, 32>}, {pipeline_mode = #tpu.pipeline_mode<synchronous>, transform_indices = @transform_1, window_bounds = array<i64: 32, 32>}, {pipeline_mode = #tpu.pipeline_mode<synchronous>, transform_indices = @transform_2, window_bounds = array<i64: 1, 32>}, {pipeline_mode = #tpu.pipeline_mode<synchronous>, transform_indices = @transform_3, window_bounds = array<i64: 32, 32>}, {pipeline_mode = #tpu.pipeline_mode<synchronous>, transform_indices = @transform_4, window_bounds = array<i64: 1, 32>}, {pipeline_mode = #tpu.pipeline_mode<synchronous>, transform_indices = @transform_5, window_bounds = array<i64: 1, 32>}, {pipeline_mode = #tpu.pipeline_mode<synchronous>, transform_indices = @transform_6, window_bounds = array<i64: 1, 1>}, {transform_indices = @transform_7, window_bounds = array<i64: 1, 8>}]} {
    %c0 = arith.constant 0 : index
    %c0_0 = arith.constant 0 : index
    %0 = vector.load %arg1[%c0, %c0_0] : memref<8x32xf32, #tpu.memory_space<vmem>>, vector<8x32xf32>
    %1 = arith.truncf %0 : vector<8x32xf32> to vector<8x32xbf16>
    %c0_1 = arith.constant 0 : index
    %c0_2 = arith.constant 0 : index
    %2 = vector.load %arg2[%c0_1, %c0_2] : memref<32x32xbf16, #tpu.memory_space<vmem>>, vector<32x32xbf16>
    %cst = arith.constant dense<0.000000e+00> : vector<8x32xf32>
    %3 = tpu.matmul %1, %2, %cst {dimension_numbers = #tpu.dot_dimension_numbers<[1], [0], [0], [1], [0, 0, 1, 1], [], []>} : vector<8x32xbf16>, vector<32x32xbf16>, vector<8x32xf32> -> vector<8x32xf32>
    %c0_3 = arith.constant 0 : index
    %c0_4 = arith.constant 0 : index
    %4 = vector.load %arg3[%c0_3, %c0_4] : memref<1x32xf32, #tpu.memory_space<vmem>>, vector<1x32xf32>
    %5 = vector.broadcast %4 : vector<1x32xf32> to vector<8x32xf32>
    %6 = arith.addf %3, %5 : vector<8x32xf32>
    %cst_5 = arith.constant 0.000000e+00 : f32
    %7 = vector.broadcast %cst_5 : f32 to vector<8x32xf32>
    %8 = arith.maximumf %6, %7 : vector<8x32xf32>
    %9 = arith.truncf %8 : vector<8x32xf32> to vector<8x32xbf16>
    %c0_6 = arith.constant 0 : index
    %c0_7 = arith.constant 0 : index
    %10 = vector.load %arg4[%c0_6, %c0_7] : memref<32x32xbf16, #tpu.memory_space<vmem>>, vector<32x32xbf16>
    %cst_8 = arith.constant dense<0.000000e+00> : vector<8x32xf32>
    %11 = tpu.matmul %9, %10, %cst_8 {dimension_numbers = #tpu.dot_dimension_numbers<[1], [0], [0], [1], [0, 0, 1, 1], [], []>} : vector<8x32xbf16>, vector<32x32xbf16>, vector<8x32xf32> -> vector<8x32xf32>
    %c0_9 = arith.constant 0 : index
    %c0_10 = arith.constant 0 : index
    %12 = vector.load %arg5[%c0_9, %c0_10] : memref<1x32xf32, #tpu.memory_space<vmem>>, vector<1x32xf32>
    %13 = vector.broadcast %12 : vector<1x32xf32> to vector<8x32xf32>
    %14 = arith.addf %11, %13 : vector<8x32xf32>
    %cst_11 = arith.constant 0.000000e+00 : f32
    %15 = vector.broadcast %cst_11 : f32 to vector<8x32xf32>
    %16 = arith.maximumf %14, %15 : vector<8x32xf32>
    %c0_12 = arith.constant 0 : index
    %c0_13 = arith.constant 0 : index
    %17 = vector.load %arg6[%c0_12, %c0_13] : memref<1x32xbf16, #tpu.memory_space<vmem>>, vector<1x32xbf16>
    %18 = arith.truncf %16 : vector<8x32xf32> to vector<8x32xbf16>
    %cst_14 = arith.constant dense<0.000000e+00> : vector<1x8xf32>
    %19 = tpu.matmul %17, %18, %cst_14 {dimension_numbers = #tpu.dot_dimension_numbers<[1], [1], [0], [0], [0, 0, 1, 0], [], []>} : vector<1x32xbf16>, vector<8x32xbf16>, vector<1x8xf32> -> vector<1x8xf32>
    %c0_15 = arith.constant 0 : index
    %c0_16 = arith.constant 0 : index
    %20 = vector.load %arg7[%c0_15, %c0_16] : memref<1x1xf32, #tpu.memory_space<vmem>>, vector<1x1xf32>
    %21 = vector.broadcast %20 : vector<1x1xf32> to vector<1x8xf32>
    %22 = arith.addf %19, %21 : vector<1x8xf32>
    %23 = arith.negf %22 : vector<1x8xf32>
    %24 = math.exp %23 : vector<1x8xf32>
    %cst_17 = arith.constant 1.000000e+00 : f32
    %25 = vector.broadcast %cst_17 : f32 to vector<1x8xf32>
    %26 = arith.addf %25, %24 : vector<1x8xf32>
    %27 = arith.divf %25, %26 : vector<1x8xf32>
    %c0_18 = arith.constant 0 : index
    %c0_19 = arith.constant 0 : index
    %28 = vector.load %arg8[%c0_18, %c0_19] : memref<1x8xf32, #tpu.memory_space<vmem>>, vector<1x8xf32>
    tpu.vector_store %arg8[%c0_18, %c0_19], %27 {strides = array<i32>} : memref<1x8xf32, #tpu.memory_space<vmem>>, vector<1x8xf32>,
    return
  }
  func.func @transform_0(%arg0: i32) -> (i32, i32) {
    %c0_i32 = arith.constant 0 : i32
    %c0_i32_0 = arith.constant 0 : i32
    return %arg0, %c0_i32 : i32, i32
  }
  func.func @transform_1(%arg0: i32) -> (i32, i32) {
    %c0_i32 = arith.constant 0 : i32
    %c0_i32_0 = arith.constant 0 : i32
    %c0_i32_1 = arith.constant 0 : i32
    return %c0_i32, %c0_i32_0 : i32, i32
  }
  func.func @transform_2(%arg0: i32) -> (i32, i32) {
    %c0_i32 = arith.constant 0 : i32
    %c0_i32_0 = arith.constant 0 : i32
    %c0_i32_1 = arith.constant 0 : i32
    return %c0_i32, %c0_i32_0 : i32, i32
  }
  func.func @transform_3(%arg0: i32) -> (i32, i32) {
    %c0_i32 = arith.constant 0 : i32
    %c0_i32_0 = arith.constant 0 : i32
    %c0_i32_1 = arith.constant 0 : i32
    return %c0_i32, %c0_i32_0 : i32, i32
  }
  func.func @transform_4(%arg0: i32) -> (i32, i32) {
    %c0_i32 = arith.constant 0 : i32
    %c0_i32_0 = arith.constant 0 : i32
    %c0_i32_1 = arith.constant 0 : i32
    return %c0_i32, %c0_i32_0 : i32, i32
  }
  func.func @transform_5(%arg0: i32) -> (i32, i32) {
    %c0_i32 = arith.constant 0 : i32
    %c0_i32_0 = arith.constant 0 : i32
    %c0_i32_1 = arith.constant 0 : i32
    return %c0_i32, %c0_i32_0 : i32, i32
  }
  func.func @transform_6(%arg0: i32) -> (i32, i32) {
    %c0_i32 = arith.constant 0 : i32
    %c0_i32_0 = arith.constant 0 : i32
    %c0_i32_1 = arith.constant 0 : i32
    return %c0_i32, %c0_i32_0 : i32, i32
  }
  func.func @transform_7(%arg0: i32) -> (i32, i32) {
    %c0_i32 = arith.constant 0 : i32
    %c0_i32_0 = arith.constant 0 : i32
    return %c0_i32, %arg0 : i32, i32
  }
}

</mosaic_0001>

<bundles_post_ra>
// kernel: tpu_custom_call.1
= control target key start
LH: loop header
LB: loop body
LE: loop exit
PB: predicated region body
PF: predicated region fallthrough
CT: control target
= control target key end

     0   :  { %s435_s0 = inlined_call_operand.hbm [shape: f32[8,32], index: 0, kind: input, shape index: {}]   ;;  %s436_s1 = inlined_call_operand.hbm [shape: bf16[32,32], index: 1, kind: input, shape index: {}]   ;;  %s437_s2 = inlined_call_operand.vmem [shape: f32[1,32], index: 2, kind: input, shape index: {}]   ;;  %s438_s3 = inlined_call_operand.hbm [shape: bf16[32,32], index: 3, kind: input, shape index: {}]   ;;  %s439_s4 = inlined_call_operand.vmem [shape: f32[1,32], index: 4, kind: input, shape index: {}]   ;;  %s440_s5 = inlined_call_operand.vmem [shape: bf16[1,32], index: 5, kind: input, shape index: {}]   ;;  %s441_s6 = inlined_call_operand.<no memory space> [shape: f32[1,1], index: 6, kind: input, shape index: {}]   ;;  %s442_s7 = inlined_call_operand.hbm [shape: f32[1,8], index: 7, kind: output, shape index: {}]  }
   0x1   :  { %v12_v0 = vstv %s441_s6 }
   0x2   :  { %13 = vst [vmem:[#allocation2] sm:$0x1] %v12_v0 }
   0x3   :  { %14 = vsyncpa [#allocation4], 0 }
   0x4   :  { %15 = vsyncpa [#allocation7], 0  ;;  %s32_s28 = sshll.u32 %s436_s1, 4  ;;  %s33_s28 = int_to_ptr.hbm [resolvable:$true] %s32_s28 }
   0x5   :  { %16 = vsyncpa [#allocation5], 0  ;;  %s360_s29 = smov [#allocation6]   ;;  %s22_s10 = sshll.u32 %s435_s0, 4  ;;  %s23_s10 = int_to_ptr.hbm [resolvable:$true] %s22_s10 }
   0x6   :  { %s34_s30 = sshll.u32 %s360_s29, 4  ;;  %s361_s11 = smov 64   ;;  %s35_s30 = int_to_ptr.vmem [resolvable:$true] %s34_s30 }
   0x7   :  { %s362_s12 = smov 4   ;;  %s363_s6 = smov [#allocation3]  }
   0x8   :  { %40 = dma.hbm_to_vmem [thread:$0]  %s33_s28, 256, %s35_s30, [#allocation7], %s361_s11, %s361_s11, %s362_s12  }
   0x9   :  { %s24_s13 = sshll.u32 %s363_s6, 4  ;;  %s47_s16 = sshll.u32 %s438_s3, 4  ;;  %s25_s13 = int_to_ptr.vmem [resolvable:$true] %s24_s13  ;;  %s48_s16 = int_to_ptr.hbm [resolvable:$true] %s47_s16 }
   0xa   :  { %27 = dma.hbm_to_vmem [thread:$0]  %s23_s10, 128, %s25_s13, [#allocation4]  }
   0xb   :  { %s364_s1 = smov [#allocation8]  }
   0xc   :  { %s49_s17 = sshll.u32 %s364_s1, 4  ;;  %s50_s17 = int_to_ptr.vmem [resolvable:$true] %s49_s17 }
   0xd   :  { %55 = dma.hbm_to_vmem [thread:$0]  %s48_s16, 256, %s50_s17, [#allocation7], %s361_s11, %s361_s11, %s362_s12  }
   0xe   :  { %354 = dma.done.wait [#allocation4], 128  }
   0xf   :  { %355 = vsyncadd [#allocation4], 4294967168 }
  0x10   :  { %356 = dma.done.wait [#allocation7], 512  }
  0x11   :  { %357 = vsyncadd [#allocation7], 4294966784  ;;  %v241_v1 = vld [vmem:[#allocation6 + $0x8] sm:$0xff]  ;;  %v240_v2 = vld [vmem:[#allocation6] sm:$0xff]  ;;  %vm97_vm0 = vcmask 261120   ;;  %v365_v14 = vmov 0  }
  0x12   :  { %107 = vmatpush.bf16.msra.mxu0 %v241_v1  ;;  %v75_v3 = vld [vmem:[#allocation3] sm:$0xff]  ;;  %v242_v6 = vld [vmem:[#allocation8] sm:$0xff]  ;;  %251 = vset.pattern.permute.xlu0 %v365_v14  ;;  %s209_s23 = sshll.u32 %s442_s7, 4  ;;  %vm200_vm4 = vcmask 57344   ;;  %s210_s23 = int_to_ptr.hbm [resolvable:$true] %s209_s23 }
  0x13   :  { %v76_v4 = vpack.c.bf16 %v75_v3, %v75_v3  ;;  %v243_v5 = vld [vmem:[#allocation8 + $0x8] sm:$0xff]  ;;  %v252_v7 = vld [vmem:[%s437_s2] ss:$0 sm:$0xff] }
  0x14   :  { %145 = vmatpush.bf16.msra.mxu1 %v243_v5  ;;  %v155_v13 = vld [vmem:[#allocation2] sm:$0x1] }
  0x15   :  { %158 = vperm.xlu0 %251, %v155_v13   ;;  %v253_v15 = vld [vmem:[%s439_s4] ss:$0 sm:$0xff]  ;;  %s366_s4 = smov [#allocation9]  }
  0x16   :  { %108 = vmatpush.bf16.msra.mxu0 %v240_v2  ;;  %v153_v22 = vld [vmem:[%s440_s5] sm:$0x1]  ;;  %s207_s5 = sshll.u32 %s366_s4, 4  ;;  %s208_s5 = int_to_ptr.vmem [resolvable:$true] %s207_s5 }
  0x18   :  { %146 = vmatpush.bf16.msra.mxu1 %v242_v6 }
  0x19   :  { %228 = vmatmul.msk.bf16.vlgmr.msra.gmra.mxu0 %vm97_vm0, %v76_v4 }
  0x87   :  { %v159_v23 = vpop.permute.xlu0 %158 }
  0x88   :  { %v161_v24 = vperm.slane %v159_v23, 0 }
  0x96   :  { %v110_v8 = vpop.f32.mrf.mxu0 }
  0x97   :  { %v111_v9 = vadd.f32 %v252_v7, %v110_v8 }
  0x99   :  { %v114_v10 = vmax.f32 %v111_v9, 0.0 }
  0x9b   :  { %v115_v11 = vpack.c.bf16 %v114_v10, %v114_v10 }
  0x9d   :  { %237 = vmatmul.msk.bf16.vlgmr.msra.gmra.mxu1 %vm97_vm0, %v115_v11 }
  0x9e   :  { %v112_v12 = vpop.f32.mrf.mxu0 }
 0x11a   :  { %v148_v16 = vpop.f32.mrf.mxu1 }
 0x11b   :  { %v149_v17 = vadd.f32 %v253_v15, %v148_v16 }
 0x11d   :  { %v152_v18 = vmax.f32 %v149_v17, 0.0 }
 0x11f   :  { %v154_v19 = vpack.c.bf16 %v152_v18, %v152_v18 }
 0x121   :  { %v166_v20 = vsel %vm97_vm0, %v154_v19, 0 }
 0x122   :  { %v150_v21 = vpop.f32.mrf.mxu1  ;;  %175 = vmatpush.bf16.xpose.msra.mxu2 %v166_v20 }
 0x129   :  { %238 = vmatmul.msk.bf16.vlgmr.msra.gmra.mxu2 %vm97_vm0, %v153_v22 }
 0x1ac   :  { %v177_v25 = vpop.f32.mrf.mxu2 }
 0x1ad   :  { %v178_v26 = vadd.f32 %v177_v25, %v161_v24 }
 0x1af   :  { %v239_v27 = vmul.f32 -1.442695, %v178_v26 }
 0x1b1   :  { %254 = vpow2.f32 %v239_v27 }
 0x1b4   :  { %v179_v28 = vpop.f32.mrf.mxu2 }
 0x1b7   :  { %v255_v29 = vpop.eup %254 }
 0x1b8   :  { %v184_v30 = vadd.f32 1.0, %v255_v29 }
 0x1ba   :  { %256 = vrcp.f32 %v184_v30  ;;  %v196_v34 = vand.u32 2147483648, %v184_v30  ;;  %v194_v36 = vand.u32 2147483647, %v184_v30  ;;  %vm190_vm2 = vweird.f32 %v184_v30 }
 0x1bc   :  { %v197_v38 = vor.u32 1.1754944e-38, %v196_v34  ;;  %vm195_vm5 = vcmp.eq.f32.partialorder %v194_v36, 8.507059e+37 }
 0x1c0   :  { %v257_v31 = vpop.eup %256 }
 0x1c1   :  { %v186_v32 = vmul.f32 %v257_v31, %v184_v30  ;;  %vm191_vm1 = vweird.f32 %v257_v31 }
 0x1c2   :  { %vm192_vm3 = vmor %vm190_vm2, %vm191_vm1 }
 0x1c3   :  { %v187_v33 = vsub.f32 1.0, %v186_v32 }
 0x1c5   :  { %v188_v35 = vmul.f32 %v257_v31, %v187_v33 }
 0x1c7   :  { %v189_v37 = vadd.f32 %v257_v31, %v188_v35 }
 0x1c9   :  { %v193_v39 = vsel %vm192_vm3, %v257_v31, %v189_v37 }
 0x1ca   :  { %v198_v40 = vsel %vm195_vm5, %v197_v38, %v193_v39 }
 0x1cb   :  { %201 = vst.msk [vmem:[#allocation9] sm:$0x1] %vm200_vm4, %v198_v40 }
 0x1cc   :  { %212 = dma.vmem_to_hbm [thread:$0]  %s208_s5, 16, %s210_s23, [#allocation5]  }
 0x1cd   :  { %358 = dma.done.wait [#allocation5], 16  }
 0x1ce   :  { %359 = vsyncadd [#allocation5], 4294967280 }
 0x1cf   :  { %217 = vsyncpa [#allocation4], 1 }
 0x1d0   :  { %218 = vsyncpa [#allocation7], 1 }
 0x1d1   :  { %219 = vsyncpa [#allocation5], 1 }

</bundles_post_ra>
